<compile_context>
chip_gen: v7x
topology: tpu7x:2x2x1
jax: 0.10.0
libtpu: 0.0.40
codegen_flags: <defaults>
</compile_context>

<pallas_src>
import math

import jax
import jax.numpy as jnp
from jax.experimental import pallas as pl
from jax.experimental.pallas import tpu as pltpu


def _copy_kernel(x_ref, o_ref):
    # Identity pass-through of the current VMEM tile (pure vld -> vst).
    o_ref[...] = x_ref[...]


def _round_up(a: int, b: int) -> int:
    return ((a + b - 1) // b) * b


def _pick_lane_width(total: int) -> int:
    # Largest lane-dense width (multiple of 128) that divides the data
    # exactly; fall back to 128 (with tail padding) otherwise.
    for w in (1024, 512, 256, 128):
        if total % w == 0:
            return w
    return 128


def _pick_row_tile(rows: int, lane_w: int, itemsize: int, target_bytes: int) -> int:
    if rows <= 8:
        # Tiny input: one block spanning the full slab (block == full dims is
        # always a legal BlockSpec).
        return max(rows, 1)
    # ~target_bytes per block, multiple of 8 sublanes.
    ideal = max(8, (target_bytes // (lane_w * itemsize)) // 8 * 8)
    # Cap so the grid has >= 2 steps (megacore sharding on v7x).
    cap = max(8, _round_up(pl.cdiv(rows, 2), 8))
    row_tile = min(ideal, cap)
    # Prefer a row tile that divides `rows` exactly (no row padding needed).
    for cand in range(row_tile, 7, -8):
        if rows % cand == 0:
            return cand
    return row_tile


def embedding_forward(
    image_nchw: jax.Array, *, target_block_bytes: int = 2 * 1024 * 1024
) -> jax.Array:
    """Identity 'embedding' forward implemented as a Pallas TPU kernel.

    image_nchw: (N, C, H, W) array.  Returns an array identical to the input
    (same shape / dtype / values).
    """
    orig_shape = image_nchw.shape
    dtype = image_nchw.dtype
    itemsize = jnp.dtype(dtype).itemsize
    total = math.prod(orig_shape)

    lane_w = _pick_lane_width(total)
    rows_unpadded = pl.cdiv(total, lane_w)
    row_tile = _pick_row_tile(rows_unpadded, lane_w, itemsize, target_block_bytes)

    rows = _round_up(rows_unpadded, row_tile)
    padded_total = rows * lane_w
    grid_steps = rows // row_tile

    flat = image_nchw.reshape(-1)
    if padded_total != total:
        flat = jnp.pad(flat, (0, padded_total - total))
    x2d = flat.reshape(rows, lane_w)

    block_bytes = row_tile * lane_w * itemsize
    # Double-buffered input + (aliased) output tiles plus slack; well below
    # v7x's 64 MiB per-core VMEM even at the 2 MiB block target.
    vmem_limit = int(min(48 * 1024 * 1024, max(4 * 1024 * 1024, 6 * block_bytes)))

    y2d = pl.pallas_call(
        _copy_kernel,
        out_shape=jax.ShapeDtypeStruct((rows, lane_w), dtype),
        grid_spec=pltpu.PrefetchScalarGridSpec(
            num_scalar_prefetch=0,
            grid=(grid_steps,),
            in_specs=[pl.BlockSpec((row_tile, lane_w), lambda i: (i, 0))],
            out_specs=pl.BlockSpec((row_tile, lane_w), lambda i: (i, 0)),
        ),
        compiler_params=pltpu.CompilerParams(
            dimension_semantics=("parallel",),
            vmem_limit_bytes=vmem_limit,
        ),
        cost_estimate=pl.CostEstimate(
            flops=0,
            transcendentals=0,
            bytes_accessed=2 * padded_total * itemsize,
        ),
        # Output aliases the reshaped input slab (a private intermediate),
        # eliminating the extra HBM output allocation.
        input_output_aliases={0: 0},
    )(x2d)

    y_flat = y2d.reshape(-1)
    if padded_total != total:
        y_flat = y_flat[:total]
    return y_flat.reshape(orig_shape)


if __name__ == "__main__":
    key = jax.random.PRNGKey(0)
    # Small NCHW image consistent with an image-embedding style forward.
    x = jax.random.normal(key, (2, 4, 16, 16), dtype=jnp.float32)

    fwd = jax.jit(embedding_forward)
    y = fwd(x)
    jax.block_until_ready(y)

    # Semantics check: identity pass-through (forward() is a no-op).
    assert y.shape == x.shape and y.dtype == x.dtype
    assert bool(jnp.all(y == x))

    print("KERNEL_OK")
</pallas_src>

<mosaic_0001>
module attributes {stable_mosaic.version = 11 : i64} {
  func.func @_copy_kernel(%arg0: i32, %arg1: memref<2x1024xf32, #tpu.memory_space<vmem>>, %arg2: memref<2x1024xf32, #tpu.memory_space<vmem>>) attributes {dimension_semantics = [#tpu.dimension_semantics<parallel>], iteration_bounds = array<i64: 1>, scalar_prefetch = 0 : i64, scratch_operands = 0 : i64, tpu.core_type = #tpu.core_type<tc>, window_params = [{transform_indices = @transform_0, window_bounds = array<i64: 2, 1024>}, {transform_indices = @transform_1, window_bounds = array<i64: 2, 1024>}]} {
    %c0 = arith.constant 0 : index
    %c0_0 = arith.constant 0 : index
    %0 = vector.load %arg1[%c0, %c0_0] : memref<2x1024xf32, #tpu.memory_space<vmem>>, vector<2x1024xf32>
    %c0_1 = arith.constant 0 : index
    %c0_2 = arith.constant 0 : index
    %1 = vector.load %arg2[%c0_1, %c0_2] : memref<2x1024xf32, #tpu.memory_space<vmem>>, vector<2x1024xf32>
    tpu.vector_store %arg2[%c0_1, %c0_2], %0 {strides = array<i32>} : memref<2x1024xf32, #tpu.memory_space<vmem>>, vector<2x1024xf32>,
    return
  }
  func.func @transform_0(%arg0: i32) -> (i32, i32) {
    %c0_i32 = arith.constant 0 : i32
    %c0_i32_0 = arith.constant 0 : i32
    return %arg0, %c0_i32 : i32, i32
  }
  func.func @transform_1(%arg0: i32) -> (i32, i32) {
    %c0_i32 = arith.constant 0 : i32
    %c0_i32_0 = arith.constant 0 : i32
    return %arg0, %c0_i32 : i32, i32
  }
}

</mosaic_0001>

<bundles_post_ra>
// kernel: embedding_forward.1
= control target key start
LH: loop header
LB: loop body
LE: loop exit
PB: predicated region body
PF: predicated region fallthrough
CT: control target
= control target key end

     0   :  { %s38_s0 = inlined_call_operand.vmem [shape: f32[2,1024], index: 0, kind: input, shape index: {}, may-alias: {0,1}]   ;;  %s39_s1 = inlined_call_operand.vmem [shape: f32[2,1024], index: 1, kind: output, shape index: {}, may-alias: {0,1}]  }
   0x1   :  { %v8_v0 = vld [vmem:[%s38_s0] sm:$0xff]  ;;  %v9_v1 = vld [vmem:[%s38_s0 + $0x8] sm:$0xff] }
   0x2   :  { %10 = vst [vmem:[%s39_s1] sm:$0xff] %v8_v0  ;;  %11 = vst [vmem:[%s39_s1 + $0x8] sm:$0xff] %v9_v1 }

</bundles_post_ra>
